<compile_context>
chip_gen: v7x
topology: tpu7x:2x2x1
jax: 0.10.0
libtpu: 0.0.40
codegen_flags: <defaults>
</compile_context>

<pallas_src>
import functools

import numpy as np
import jax
import jax.numpy as jnp
from jax import lax
from jax.experimental import pallas as pl
from jax.experimental.pallas import tpu as pltpu


# ---------------------------------------------------------------------------
# Pallas kernel: Bt batch elements per grid step.
# ---------------------------------------------------------------------------
def _msdecomp_kernel(x_ref, pool_ref, wcat_ref, lw_ref, lb_ref,
                     res_ref, mean_ref, *, n_k, C, L, Bt, taps, matmul_dtype):
    pool = pool_ref[...].astype(matmul_dtype)        # (n_k*C, C)   fused pooling mats
    wcat = wcat_ref[...].astype(matmul_dtype)        # (c_out, taps*C) fused conv taps

    def shifted(v, t):
        # shifted(v, t)[c, l] == v[c, (l + t - 1) % L]   (circular padding=1)
        s = (1 - t) % L
        return v if s == 0 else pltpu.roll(v, shift=s, axis=1)

    cols = []
    for b in range(Bt):
        x = x_ref[b].astype(jnp.float32)             # (C, L)

        # --- fused multi-scale replicate-pad moving averages: (n_k*C, L) ----
        mm = jnp.dot(pool, x.astype(matmul_dtype),
                     preferred_element_type=jnp.float32,
                     precision=lax.Precision.HIGHEST)

        # --- softmax mixture weights from Linear(1, n_k): x*w_k + b_k -------
        logits = [x * lw_ref[k] + lb_ref[k] for k in range(n_k)]
        m = logits[0]
        for k in range(1, n_k):
            m = jnp.maximum(m, logits[k])
        exps = [jnp.exp(l - m) for l in logits]
        denom = exps[0]
        for k in range(1, n_k):
            denom = denom + exps[k]

        # exact softmax normalization (NO approximate reciprocal: the bf16-
        # grade approx reciprocal pushed the result past the 1e-3 tolerance)
        num = mm[0:C] * exps[0]
        for k in range(1, n_k):
            num = num + mm[k * C:(k + 1) * C] * exps[k]
        mean = num / denom
        res = x - mean

        # circular shifts per sequence (before any lane concatenation!)
        for v in (res, mean):
            v = v.astype(matmul_dtype)
            cols.append(jnp.concatenate([shifted(v, t) for t in range(taps)],
                                        axis=0))     # (taps*C, L)

    # one fused MXU call for all taps / streams / batch elements
    stacked = jnp.concatenate(cols, axis=1)          # (taps*C, 2*Bt*L)
    out = jnp.dot(wcat, stacked, preferred_element_type=jnp.float32,
                  precision=lax.Precision.HIGHEST)

    for b in range(Bt):
        res_ref[b] = out[:, (2 * b) * L:(2 * b + 1) * L].astype(res_ref.dtype)
        mean_ref[b] = out[:, (2 * b + 1) * L:(2 * b + 2) * L].astype(mean_ref.dtype)


# ---------------------------------------------------------------------------
# Parameter preprocessing (plain numpy, outside the hot path)
# ---------------------------------------------------------------------------
def make_pool_matrix(C, k):
    """A_k @ x == moving_avg(kernel=k, stride=1) along an axis of size C with
    replicate padding of (k-1)//2 on both sides (odd k, as the module needs)."""
    p = (k - 1) // 2
    A = np.zeros((C, C), np.float32)
    for c in range(C):
        for jj in range(k):
            src = min(max(c + jj - p, 0), C - 1)
            A[c, src] += 1.0 / k
    return A


# ---------------------------------------------------------------------------
# Wrapper
# ---------------------------------------------------------------------------
def msdecomp_pallas(x, kernel_sizes, lin_w, lin_b, conv_w, *, bt=2,
                    matmul_dtype=jnp.float32):
    B, C, L = x.shape
    c_out, c_in, taps = conv_w.shape
    assert c_in == C and taps == 3
    n_k = len(kernel_sizes)

    # largest per-step batch block that divides B
    bt = max(1, min(bt, B))
    while B % bt:
        bt -= 1

    # fused pooling matrices: (n_k*C, C)
    pool_cat = jnp.asarray(
        np.concatenate([make_pool_matrix(C, k) for k in kernel_sizes], axis=0))
    # fused circular-conv weight: (c_out, taps*C), tap-major on the contraction
    wcat = jnp.concatenate([conv_w[:, :, t] for t in range(taps)], axis=1)

    lw = jnp.asarray(lin_w).reshape(n_k).astype(jnp.float32)   # Linear(1, n_k) W
    lb = jnp.asarray(lin_b).reshape(n_k).astype(jnp.float32)   # Linear(1, n_k) b

    kernel = functools.partial(_msdecomp_kernel, n_k=n_k, C=C, L=L, Bt=bt,
                               taps=taps, matmul_dtype=matmul_dtype)

    out_shape = (jax.ShapeDtypeStruct((B, c_out, L), x.dtype),
                 jax.ShapeDtypeStruct((B, c_out, L), x.dtype))

    res, mean = pl.pallas_call(
        kernel,
        out_shape=out_shape,
        grid_spec=pltpu.PrefetchScalarGridSpec(
            num_scalar_prefetch=0,
            grid=(B // bt,),
            in_specs=[
                pl.BlockSpec((bt, C, L), lambda i: (i, 0, 0)),          # x
                pl.BlockSpec((n_k * C, C), lambda i: (0, 0)),           # pooling mats
                pl.BlockSpec((c_out, taps * C), lambda i: (0, 0)),      # conv taps
                pl.BlockSpec(memory_space=pltpu.MemorySpace.SMEM),      # linear W
                pl.BlockSpec(memory_space=pltpu.MemorySpace.SMEM),      # linear b
            ],
            out_specs=(
                pl.BlockSpec((bt, c_out, L), lambda i: (i, 0, 0)),      # res
                pl.BlockSpec((bt, c_out, L), lambda i: (i, 0, 0)),      # moving_mean
            ),
        ),
        compiler_params=pltpu.CompilerParams(
            dimension_semantics=("parallel",),          # v7x: 2 TCs split batch
            vmem_limit_bytes=32 * 1024 * 1024),
    )(x, pool_cat, wcat, lw, lb)
    return res, mean


# ---------------------------------------------------------------------------
# Pure-JAX reference (mirrors the PyTorch forward exactly)
# ---------------------------------------------------------------------------
def ref_forward(x, kernel_sizes, lin_w, lin_b, conv_w):
    B, C, L = x.shape
    mms = []
    for k in kernel_sizes:
        p = (k - 1) // 2
        front = jnp.repeat(x[:, 0:1, :], p, axis=1)
        end = jnp.repeat(x[:, C - 1:C, :], p, axis=1)
        xp = jnp.concatenate([front, x, end], axis=1)          # (B, C+2p, L)
        mm = jnp.mean(jnp.stack([xp[:, j:j + C, :] for j in range(k)], axis=0),
                      axis=0)                                  # (B, C, L)
        mms.append(mm)
    mm_stack = jnp.stack(mms, axis=-1)                         # (B, C, L, nK)
    logits = x[..., None] * lin_w[:, 0] + lin_b                # Linear(1, nK)
    soft = jax.nn.softmax(logits, axis=-1)
    moving_mean = jnp.sum(mm_stack * soft, axis=-1)
    res = x - moving_mean

    def conv_circ(v):
        vp = jnp.concatenate([v[:, :, -1:], v, v[:, :, :1]], axis=-1)
        windows = jnp.stack([vp[:, :, t:t + L] for t in range(3)], axis=-1)
        return jnp.einsum('oct,bclt->bol', conv_w, windows,
                          precision=lax.Precision.HIGHEST)

    return conv_circ(res), conv_circ(moving_mean)


# ---------------------------------------------------------------------------
if __name__ == "__main__":
    B, C, L = 4, 8, 128       # batch, c_in (= decomposition axis), seq length
    c_out = 8
    kernel_sizes = (3, 5)     # must be odd (as the PyTorch module requires)
    n_k = len(kernel_sizes)

    key = jax.random.PRNGKey(0)
    kx, kw, klw, klb = jax.random.split(key, 4)
    x = jax.random.normal(kx, (B, C, L), dtype=jnp.float32)
    conv_w = 0.1 * jax.random.normal(kw, (c_out, C, 3), dtype=jnp.float32)  # Conv1d weight
    lin_w = jax.random.normal(klw, (n_k, 1), dtype=jnp.float32)             # Linear(1, n_k)
    lin_b = jax.random.normal(klb, (n_k,), dtype=jnp.float32)

    res, mean = msdecomp_pallas(x, kernel_sizes, lin_w, lin_b, conv_w, bt=2)
    jax.block_until_ready((res, mean))

    res_ref, mean_ref = ref_forward(x, kernel_sizes, lin_w, lin_b, conv_w)
    np.testing.assert_allclose(np.asarray(res), np.asarray(res_ref), rtol=1e-3, atol=1e-3)
    np.testing.assert_allclose(np.asarray(mean), np.asarray(mean_ref), rtol=1e-3, atol=1e-3)

    print("KERNEL_OK")
</pallas_src>

<mosaic_0001>
module attributes {stable_mosaic.version = 11 : i64} {
  func.func @_msdecomp_kernel(%arg0: i32, %arg1: memref<2x8x128xf32, #tpu.memory_space<vmem>>, %arg2: memref<16x8xf32, #tpu.memory_space<vmem>>, %arg3: memref<8x24xf32, #tpu.memory_space<vmem>>, %arg4: memref<2xf32, #tpu.memory_space<smem>>, %arg5: memref<2xf32, #tpu.memory_space<smem>>, %arg6: memref<2x8x128xf32, #tpu.memory_space<vmem>>, %arg7: memref<2x8x128xf32, #tpu.memory_space<vmem>>) attributes {dimension_semantics = [#tpu.dimension_semantics<parallel>], iteration_bounds = array<i64: 2>, scalar_prefetch = 0 : i64, scratch_operands = 0 : i64, tpu.core_type = #tpu.core_type<tc>, window_params = [{transform_indices = @transform_0, window_bounds = array<i64: 2, 8, 128>}, {pipeline_mode = #tpu.pipeline_mode<synchronous>, transform_indices = @transform_1, window_bounds = array<i64: 16, 8>}, {pipeline_mode = #tpu.pipeline_mode<synchronous>, transform_indices = @transform_2, window_bounds = array<i64: 8, 24>}, {transform_indices = @transform_3, window_bounds = array<i64: 2>}, {transform_indices = @transform_4, window_bounds = array<i64: 2>}, {transform_indices = @transform_5, window_bounds = array<i64: 2, 8, 128>}, {transform_indices = @transform_6, window_bounds = array<i64: 2, 8, 128>}]} {
    %c0 = arith.constant 0 : index
    %c0_0 = arith.constant 0 : index
    %0 = vector.load %arg2[%c0, %c0_0] : memref<16x8xf32, #tpu.memory_space<vmem>>, vector<16x8xf32>
    %c0_1 = arith.constant 0 : index
    %c0_2 = arith.constant 0 : index
    %1 = vector.load %arg3[%c0_1, %c0_2] : memref<8x24xf32, #tpu.memory_space<vmem>>, vector<8x24xf32>
    %c0_3 = arith.constant 0 : index
    %c0_4 = arith.constant 0 : index
    %c0_5 = arith.constant 0 : index
    %2 = vector.load %arg1[%c0_3, %c0_4, %c0_5] : memref<2x8x128xf32, #tpu.memory_space<vmem>>, vector<1x8x128xf32>
    %3 = vector.shape_cast %2 : vector<1x8x128xf32> to vector<8x128xf32>
    %cst = arith.constant dense<0.000000e+00> : vector<16x128xf32>
    %4 = tpu.matmul %0, %3, %cst {dimension_numbers = #tpu.dot_dimension_numbers<[1], [0], [0], [1], [0, 0, 1, 1], [], []>, precision = #tpu.contract_precision<fp32>} : vector<16x8xf32>, vector<8x128xf32>, vector<16x128xf32> -> vector<16x128xf32>
    %c0_6 = arith.constant 0 : index
    %5 = memref.load %arg4[%c0_6] : memref<2xf32, #tpu.memory_space<smem>>
    %6 = vector.broadcast %5 : f32 to vector<8x128xf32>
    %7 = arith.mulf %3, %6 : vector<8x128xf32>
    %c0_7 = arith.constant 0 : index
    %8 = memref.load %arg5[%c0_7] : memref<2xf32, #tpu.memory_space<smem>>
    %9 = vector.broadcast %8 : f32 to vector<8x128xf32>
    %10 = arith.addf %7, %9 : vector<8x128xf32>
    %c1 = arith.constant 1 : index
    %11 = memref.load %arg4[%c1] : memref<2xf32, #tpu.memory_space<smem>>
    %12 = vector.broadcast %11 : f32 to vector<8x128xf32>
    %13 = arith.mulf %3, %12 : vector<8x128xf32>
    %c1_8 = arith.constant 1 : index
    %14 = memref.load %arg5[%c1_8] : memref<2xf32, #tpu.memory_space<smem>>
    %15 = vector.broadcast %14 : f32 to vector<8x128xf32>
    %16 = arith.addf %13, %15 : vector<8x128xf32>
    %17 = arith.maximumf %10, %16 : vector<8x128xf32>
    %18 = arith.subf %10, %17 : vector<8x128xf32>
    %19 = math.exp %18 : vector<8x128xf32>
    %20 = arith.subf %16, %17 : vector<8x128xf32>
    %21 = math.exp %20 : vector<8x128xf32>
    %22 = arith.addf %19, %21 : vector<8x128xf32>
    %23 = vector.extract_strided_slice %4 {offsets = [0, 0], sizes = [8, 128], strides = [1, 1]} : vector<16x128xf32> to vector<8x128xf32>
    %24 = arith.mulf %23, %19 : vector<8x128xf32>
    %25 = vector.extract_strided_slice %4 {offsets = [8, 0], sizes = [8, 128], strides = [1, 1]} : vector<16x128xf32> to vector<8x128xf32>
    %26 = arith.mulf %25, %21 : vector<8x128xf32>
    %27 = arith.addf %24, %26 : vector<8x128xf32>
    %28 = arith.divf %27, %22 : vector<8x128xf32>
    %29 = arith.subf %3, %28 : vector<8x128xf32>
    %c1_i32 = arith.constant 1 : i32
    %30 = tpu.dynamic_rotate %29 by %c1_i32 dim 1 : vector<8x128xf32>, i32 -> vector<8x128xf32>
    %c127_i32 = arith.constant 127 : i32
    %31 = tpu.dynamic_rotate %29 by %c127_i32 dim 1 : vector<8x128xf32>, i32 -> vector<8x128xf32>
    %32 = tpu.concatenate %30, %29, %31 in 0 : vector<8x128xf32>, vector<8x128xf32>, vector<8x128xf32> -> vector<24x128xf32>
    %c1_i32_9 = arith.constant 1 : i32
    %33 = tpu.dynamic_rotate %28 by %c1_i32_9 dim 1 : vector<8x128xf32>, i32 -> vector<8x128xf32>
    %c127_i32_10 = arith.constant 127 : i32
    %34 = tpu.dynamic_rotate %28 by %c127_i32_10 dim 1 : vector<8x128xf32>, i32 -> vector<8x128xf32>
    %35 = tpu.concatenate %33, %28, %34 in 0 : vector<8x128xf32>, vector<8x128xf32>, vector<8x128xf32> -> vector<24x128xf32>
    %c1_11 = arith.constant 1 : index
    %c0_12 = arith.constant 0 : index
    %c0_13 = arith.constant 0 : index
    %36 = vector.load %arg1[%c1_11, %c0_12, %c0_13] : memref<2x8x128xf32, #tpu.memory_space<vmem>>, vector<1x8x128xf32>
    %37 = vector.shape_cast %36 : vector<1x8x128xf32> to vector<8x128xf32>
    %cst_14 = arith.constant dense<0.000000e+00> : vector<16x128xf32>
    %38 = tpu.matmul %0, %37, %cst_14 {dimension_numbers = #tpu.dot_dimension_numbers<[1], [0], [0], [1], [0, 0, 1, 1], [], []>, precision = #tpu.contract_precision<fp32>} : vector<16x8xf32>, vector<8x128xf32>, vector<16x128xf32> -> vector<16x128xf32>
    %c0_15 = arith.constant 0 : index
    %39 = memref.load %arg4[%c0_15] : memref<2xf32, #tpu.memory_space<smem>>
    %40 = vector.broadcast %39 : f32 to vector<8x128xf32>
    %41 = arith.mulf %37, %40 : vector<8x128xf32>
    %c0_16 = arith.constant 0 : index
    %42 = memref.load %arg5[%c0_16] : memref<2xf32, #tpu.memory_space<smem>>
    %43 = vector.broadcast %42 : f32 to vector<8x128xf32>
    %44 = arith.addf %41, %43 : vector<8x128xf32>
    %c1_17 = arith.constant 1 : index
    %45 = memref.load %arg4[%c1_17] : memref<2xf32, #tpu.memory_space<smem>>
    %46 = vector.broadcast %45 : f32 to vector<8x128xf32>
    %47 = arith.mulf %37, %46 : vector<8x128xf32>
    %c1_18 = arith.constant 1 : index
    %48 = memref.load %arg5[%c1_18] : memref<2xf32, #tpu.memory_space<smem>>
    %49 = vector.broadcast %48 : f32 to vector<8x128xf32>
    %50 = arith.addf %47, %49 : vector<8x128xf32>
    %51 = arith.maximumf %44, %50 : vector<8x128xf32>
    %52 = arith.subf %44, %51 : vector<8x128xf32>
    %53 = math.exp %52 : vector<8x128xf32>
    %54 = arith.subf %50, %51 : vector<8x128xf32>
    %55 = math.exp %54 : vector<8x128xf32>
    %56 = arith.addf %53, %55 : vector<8x128xf32>
    %57 = vector.extract_strided_slice %38 {offsets = [0, 0], sizes = [8, 128], strides = [1, 1]} : vector<16x128xf32> to vector<8x128xf32>
    %58 = arith.mulf %57, %53 : vector<8x128xf32>
    %59 = vector.extract_strided_slice %38 {offsets = [8, 0], sizes = [8, 128], strides = [1, 1]} : vector<16x128xf32> to vector<8x128xf32>
    %60 = arith.mulf %59, %55 : vector<8x128xf32>
    %61 = arith.addf %58, %60 : vector<8x128xf32>
    %62 = arith.divf %61, %56 : vector<8x128xf32>
    %63 = arith.subf %37, %62 : vector<8x128xf32>
    %c1_i32_19 = arith.constant 1 : i32
    %64 = tpu.dynamic_rotate %63 by %c1_i32_19 dim 1 : vector<8x128xf32>, i32 -> vector<8x128xf32>
    %c127_i32_20 = arith.constant 127 : i32
    %65 = tpu.dynamic_rotate %63 by %c127_i32_20 dim 1 : vector<8x128xf32>, i32 -> vector<8x128xf32>
    %66 = tpu.concatenate %64, %63, %65 in 0 : vector<8x128xf32>, vector<8x128xf32>, vector<8x128xf32> -> vector<24x128xf32>
    %c1_i32_21 = arith.constant 1 : i32
    %67 = tpu.dynamic_rotate %62 by %c1_i32_21 dim 1 : vector<8x128xf32>, i32 -> vector<8x128xf32>
    %c127_i32_22 = arith.constant 127 : i32
    %68 = tpu.dynamic_rotate %62 by %c127_i32_22 dim 1 : vector<8x128xf32>, i32 -> vector<8x128xf32>
    %69 = tpu.concatenate %67, %62, %68 in 0 : vector<8x128xf32>, vector<8x128xf32>, vector<8x128xf32> -> vector<24x128xf32>
    %70 = tpu.concatenate %32, %35, %66, %69 in 1 : vector<24x128xf32>, vector<24x128xf32>, vector<24x128xf32>, vector<24x128xf32> -> vector<24x512xf32>
    %cst_23 = arith.constant dense<0.000000e+00> : vector<8x512xf32>
    %71 = tpu.matmul %1, %70, %cst_23 {dimension_numbers = #tpu.dot_dimension_numbers<[1], [0], [0], [1], [0, 0, 1, 1], [], []>, precision = #tpu.contract_precision<fp32>} : vector<8x24xf32>, vector<24x512xf32>, vector<8x512xf32> -> vector<8x512xf32>
    %72 = vector.extract_strided_slice %71 {offsets = [0, 0], sizes = [8, 128], strides = [1, 1]} : vector<8x512xf32> to vector<8x128xf32>
    %c0_24 = arith.constant 0 : index
    %c0_25 = arith.constant 0 : index
    %c0_26 = arith.constant 0 : index
    %73 = vector.load %arg6[%c0_24, %c0_25, %c0_26] : memref<2x8x128xf32, #tpu.memory_space<vmem>>, vector<1x8x128xf32>
    %74 = vector.shape_cast %73 : vector<1x8x128xf32> to vector<8x128xf32>
    %75 = vector.shape_cast %72 : vector<8x128xf32> to vector<1x8x128xf32>
    tpu.vector_store %arg6[%c0_24, %c0_25, %c0_26], %75 {strides = array<i32>} : memref<2x8x128xf32, #tpu.memory_space<vmem>>, vector<1x8x128xf32>,
    %76 = vector.extract_strided_slice %71 {offsets = [0, 128], sizes = [8, 128], strides = [1, 1]} : vector<8x512xf32> to vector<8x128xf32>
    %c0_27 = arith.constant 0 : index
    %c0_28 = arith.constant 0 : index
    %c0_29 = arith.constant 0 : index
    %77 = vector.load %arg7[%c0_27, %c0_28, %c0_29] : memref<2x8x128xf32, #tpu.memory_space<vmem>>, vector<1x8x128xf32>
    %78 = vector.shape_cast %77 : vector<1x8x128xf32> to vector<8x128xf32>
    %79 = vector.shape_cast %76 : vector<8x128xf32> to vector<1x8x128xf32>
    tpu.vector_store %arg7[%c0_27, %c0_28, %c0_29], %79 {strides = array<i32>} : memref<2x8x128xf32, #tpu.memory_space<vmem>>, vector<1x8x128xf32>,
    %80 = vector.extract_strided_slice %71 {offsets = [0, 256], sizes = [8, 128], strides = [1, 1]} : vector<8x512xf32> to vector<8x128xf32>
    %c1_30 = arith.constant 1 : index
    %c0_31 = arith.constant 0 : index
    %c0_32 = arith.constant 0 : index
    %81 = vector.load %arg6[%c1_30, %c0_31, %c0_32] : memref<2x8x128xf32, #tpu.memory_space<vmem>>, vector<1x8x128xf32>
    %82 = vector.shape_cast %81 : vector<1x8x128xf32> to vector<8x128xf32>
    %83 = vector.shape_cast %80 : vector<8x128xf32> to vector<1x8x128xf32>
    tpu.vector_store %arg6[%c1_30, %c0_31, %c0_32], %83 {strides = array<i32>} : memref<2x8x128xf32, #tpu.memory_space<vmem>>, vector<1x8x128xf32>,
    %84 = vector.extract_strided_slice %71 {offsets = [0, 384], sizes = [8, 128], strides = [1, 1]} : vector<8x512xf32> to vector<8x128xf32>
    %c1_33 = arith.constant 1 : index
    %c0_34 = arith.constant 0 : index
    %c0_35 = arith.constant 0 : index
    %85 = vector.load %arg7[%c1_33, %c0_34, %c0_35] : memref<2x8x128xf32, #tpu.memory_space<vmem>>, vector<1x8x128xf32>
    %86 = vector.shape_cast %85 : vector<1x8x128xf32> to vector<8x128xf32>
    %87 = vector.shape_cast %84 : vector<8x128xf32> to vector<1x8x128xf32>
    tpu.vector_store %arg7[%c1_33, %c0_34, %c0_35], %87 {strides = array<i32>} : memref<2x8x128xf32, #tpu.memory_space<vmem>>, vector<1x8x128xf32>,
    return
  }
  func.func @transform_0(%arg0: i32) -> (i32, i32, i32) {
    %c0_i32 = arith.constant 0 : i32
    %c0_i32_0 = arith.constant 0 : i32
    %c0_i32_1 = arith.constant 0 : i32
    return %arg0, %c0_i32, %c0_i32_0 : i32, i32, i32
  }
  func.func @transform_1(%arg0: i32) -> (i32, i32) {
    %c0_i32 = arith.constant 0 : i32
    %c0_i32_0 = arith.constant 0 : i32
    %c0_i32_1 = arith.constant 0 : i32
    return %c0_i32, %c0_i32_0 : i32, i32
  }
  func.func @transform_2(%arg0: i32) -> (i32, i32) {
    %c0_i32 = arith.constant 0 : i32
    %c0_i32_0 = arith.constant 0 : i32
    %c0_i32_1 = arith.constant 0 : i32
    return %c0_i32, %c0_i32_0 : i32, i32
  }
  func.func @transform_3(%arg0: i32) -> i32 {
    %c0_i32 = arith.constant 0 : i32
    %c0_i32_0 = arith.constant 0 : i32
    return %c0_i32 : i32
  }
  func.func @transform_4(%arg0: i32) -> i32 {
    %c0_i32 = arith.constant 0 : i32
    %c0_i32_0 = arith.constant 0 : i32
    return %c0_i32 : i32
  }
  func.func @transform_5(%arg0: i32) -> (i32, i32, i32) {
    %c0_i32 = arith.constant 0 : i32
    %c0_i32_0 = arith.constant 0 : i32
    %c0_i32_1 = arith.constant 0 : i32
    return %arg0, %c0_i32, %c0_i32_0 : i32, i32, i32
  }
  func.func @transform_6(%arg0: i32) -> (i32, i32, i32) {
    %c0_i32 = arith.constant 0 : i32
    %c0_i32_0 = arith.constant 0 : i32
    %c0_i32_1 = arith.constant 0 : i32
    return %arg0, %c0_i32, %c0_i32_0 : i32, i32, i32
  }
}

</mosaic_0001>

<bundles_post_ra>
// kernel: tpu_custom_call.1
= control target key start
LH: loop header
LB: loop body
LE: loop exit
PB: predicated region body
PF: predicated region fallthrough
CT: control target
= control target key end

     0   :  { %12 = vsyncpa [#allocation3], 0  ;;  %s3555_s0 = inlined_call_operand.hbm [shape: f32[4,8,128], index: 0, kind: input, shape index: {}]   ;;  %s3556_s1 = inlined_call_operand.vmem [shape: f32[16,8], index: 1, kind: input, shape index: {}]   ;;  %s3557_s2 = inlined_call_operand.vmem [shape: f32[8,24], index: 2, kind: input, shape index: {}]   ;;  %s3558_s3 = inlined_call_operand.vmem [shape: f32[2], index: 3, kind: input, shape index: {}]   ;;  %s3559_s4 = inlined_call_operand.vmem [shape: f32[2], index: 4, kind: input, shape index: {}]   ;;  %s3560_s5 = inlined_call_operand.hbm [shape: f32[4,8,128], index: 5, kind: output, shape index: {0}]   ;;  %s3561_s6 = inlined_call_operand.hbm [shape: f32[4,8,128], index: 6, kind: output, shape index: {1}]  }
   0x1   :  { %14 = vsyncpa [#allocation3 + $0x1], 0 }
   0x2   :  { %15 = vsyncpa [#allocation5], 0 }
   0x3   :  { %16 = vsyncpa [#allocation8], 0 }
   0x4   :  { %17 = vsyncpa [#allocation4], 0 }
   0x5   :  { %19 = vsyncpa [#allocation4 + $0x1], 0 }
   0x6   :  { %20 = vsyncpa [#allocation11], 0 }
   0x7   :  { %22 = vsyncpa [#allocation11 + $0x1], 0  ;;  %s3088_s21 = smov 0   ;;  %s3090_s22 = smov 0  }
   0x8   :  { %s3092_s23 = smov 0   ;;  %s3094_s24 = smov 0  }
   0x9 LB: > { %s3109_s25 = sadd.s32 4294967295, %s3039_s24   ;;  %s2568_s26 = sadd.s32 4294967294, %s3039_s24   ;;  %s3039_s24 = sphi %s3094_s24, %s3587_s24   ;;  %s3035_s23 = sphi %s3092_s23, %s3586_s23   ;;  %s3031_s22 = sphi %s3090_s22, %s3585_s22   ;;  %s3027_s21 = sphi %s3088_s21, %s3584_s21  }
   0xa   : > { %s3113_s27 = sadd.s32 1, %s3039_s24   ;;  %s35_s28 = sadd.s32 1, %s3035_s23 }
   0xb   : > { %s32_s29 = ssub.s32 %s3039_s24, %s3113_s27  ;;  %p42_p0 = scmp.ne.s32.totalorder %s3035_s23, %s3031_s22 }
   0xc   : > { %p33_p1 = scmp.eq.s32.totalorder %s32_s29, 0  ;;  %p43_p2 = scmp.eq.s32.totalorder %s3039_s24, 0 }
   0xd   : > { %p48_p3 = scmp.ne.s32.totalorder %s3031_s22, %s3027_s21  ;;  %p3562_p4 = scmp.eq.s32.totalorder %s3109_s25, 0 }
   0xe   : > { %s3125_s30 = scalar_select %p33_p1, %s3035_s23, %s35_s28  }
   0xf   : > { %p3127_p5 = por %p43_p2, %p42_p0  ;;  %p3133_p6 = por %p3562_p4, %p48_p3 }
  0x10   : > { %p156_p7 = scmp.eq.s32.totalorder %s3109_s25, 1  ;;  %p162_p8 = scmp.eq.s32.totalorder %s2568_s26, 1 }
  0x11   : > { %s3568_s8 = scalar_select %p3133_p6, 1, 0 }
  0x12   : > { %p2569_p9 = scmp.ge.s32.totalorder %s3039_s24, 1  ;;  %p195_p10 = scmp.lt.s32.totalorder %s3039_s24, 3 }
  0x13   : > { %p3140_p11 = por %p156_p7, %p42_p0  ;;  %p3144_p12 = por %p162_p8, %p48_p3 }
  0x14   : > { %p3148_p13 = pnand %p2569_p9, %p195_p10  ;;  %s214_s14 = sshll.u32 %s3558_s3, 4  ;;  %s215_s14 = int_to_ptr.vmem [resolvable:$true] %s214_s14 }
  0x15   : > { %s3569_s9 = scalar_select %p3140_p11, 1, 0 }
  0x16   : > { %s3570_s10 = scalar_select %p3144_p12, 1, 0 }
  0x17   : > { %s3571_s11 = scalar_select %p3148_p13, 1, 0 }
  0x18   : > { %p2796_p1 = pneg %p3148_p13  ;;  %p2816_p2 = scmp.lt.s32.totalorder %s3039_s24, 2 }
  0x19   : > { %s225_s18 = sshll.u32 %s3559_s4, 4  ;;  %s2873_s20 = scalar_lea.vmem %s215_s14, 16  ;;  %s226_s18 = int_to_ptr.vmem [resolvable:$true] %s225_s18 }
  0x1a   : > { %p3161_p7 = pnand %p2796_p1, %p3562_p4  ;;  %p3170_p3 = pnand %p2816_p2, %p3127_p5 }
  0x1b   : > { %p2874_p8 = scmp.ne.s32.totalorder %s215_s14, %s2873_s20  ;;  %p2881_p0 = scmp.lt.s32.totalorder %s215_s14, %s215_s14 }
  0x1c   : > { %s3573_s19 = scalar_select %p3170_p3, 1, 0 }
  0x1d   : > { %p2875_p9 = pneg %p3161_p7  ;;  %p2882_p4 = scmp.lt.s32.totalorder %s2873_s20, %s2873_s20 }
  0x1f   : > { %p2876_p10 = pnand %p2875_p9, %p2874_p8  ;;  %p2883_p12 = por %p2882_p4, %p2881_p0 }
  0x21   : > { %p2877_p1 = pneg %p2876_p10 }
  0x23   : > { %p2884_p11 = pnand %p2883_p12, %p2877_p1 }
  0x25   : > { %2887 = shalt.err (!%p2884_p11)
}
  0x26   : > { %s3041_s26 = smov [#allocation6]   ;;  %s236_s28 = sand.u32 1, %s3035_s23  }
  0x27   : > { %2799 = dma.vmem_to_smem (!%p3161_p7), %s215_s14, 16, %s3041_s26, [#allocation5]  }
  0x28   : > { %s2888_s29 = scalar_lea.vmem %s226_s18, 16  ;;  %p2896_p8 = scmp.lt.s32.totalorder %s226_s18, %s226_s18 }
  0x29   : > { %p2889_p5 = scmp.ne.s32.totalorder %s226_s18, %s2888_s29  ;;  %p2897_p10 = scmp.lt.s32.totalorder %s2888_s29, %s2888_s29 }
  0x2b   : > { %p2891_p2 = pnand %p2889_p5, %p2875_p9  ;;  %p2898_p13 = por %p2897_p10, %p2896_p8 }
  0x2d   : > { %p2892_p6 = pneg %p2891_p2 }
  0x2f   : > { %p2899_p3 = pnand %p2898_p13, %p2892_p6 }
  0x31   : > { %2902 = shalt.err (!%p2899_p3)
}
  0x32   : > { %s3042_s7 = smov [#allocation7]   ;;  %s2573_s12 = sshll.u32 %s236_s28, 4 }
  0x33   : > { %2802 = dma.vmem_to_smem (!%p3161_p7), %s226_s18, 16, %s3042_s7, [#allocation8]  }
  0x34   : > { %s2595_s13 = sshll.u32 %s3039_s24, 8  ;;  %s240_s20 = scalar_lea.vmem [#allocation2], %s2573_s12 }
  0x35   : > { %s3191_s17 = scalar_lea.hbm %s3555_s0, %s2595_s13  ;;  %s247_s26 = sshll.u32 %s240_s20, 4  ;;  %s3193_s26 = int_to_ptr.vmem [resolvable:$true] %s247_s26 }
  0x36   : > { %s3195_s15 = scalar_lea.sflag [#allocation3], %s236_s28  ;;  %s2903_s29 = scalar_lea.hbm %s3191_s17, 256 }
  0x37   : > { %p2904_p4 = scmp.ne.s32.totalorder %s3191_s17, %s2903_s29  ;;  %p3574_p6 = scmp.ne.s32.totalorder %s3573_s19, 0 }
  0x38   : > { %s2908_s13 = scalar_lea.hbm %s3555_s0, 512  ;;  %p2909_p0 = scmp.lt.u32.totalorder %s3191_s17, %s3555_s0 }
  0x39   : > { %p2905_p11 = pneg %p3574_p6  ;;  %p2910_p7 = scmp.lt.u32.totalorder %s2908_s13, %s2903_s29 }
  0x3a   : > { %p2912_p9 = scmp.lt.u32.totalorder %s2903_s29, %s3191_s17 }
  0x3b   : > { %p2906_p12 = pnand %p2905_p11, %p2904_p4  ;;  %p2911_p3 = por %p2910_p7, %p2909_p0 }
  0x3d   : > { %p2907_p13 = pneg %p2906_p12  ;;  %p2913_p1 = por %p2912_p9, %p2911_p3 }
  0x3f   : > { %p2914_p5 = pnand %p2913_p1, %p2907_p13 }
  0x41   : > { %2917 = shalt.err (!%p2914_p5)
}
  0x42   : > { %s2918_s28 = scalar_lea.vmem %s3193_s26, 256  ;;  %s3043_s12 = smov [#allocation2]  }
  0x43   : > { %p2919_p2 = scmp.ne.s32.totalorder %s3193_s26, %s2918_s28  ;;  %s2923_s20 = sshll.u32 %s3043_s12, 4  ;;  %s2924_s20 = int_to_ptr.vmem [resolvable:$false] %s2923_s20 }
  0x44   : > { %s2925_s18 = scalar_lea.vmem %s2924_s20, 512  ;;  %p2926_p4 = scmp.lt.s32.totalorder %s3193_s26, %s2924_s20 }
  0x45   : > { %p2921_p8 = pnand %p2919_p2, %p2905_p11  ;;  %p2927_p12 = scmp.lt.s32.totalorder %s2925_s18, %s2918_s28 }
  0x47   : > { %p2922_p10 = pneg %p2921_p8  ;;  %p2928_p0 = por %p2927_p12, %p2926_p4 }
  0x49   : > { %p2929_p7 = pnand %p2928_p0, %p2922_p10 }
  0x4b   : > { %2932 = shalt.err (!%p2929_p7)
}
  0x4c   : > { %s3044_s29 = smov 128   ;;  %s3045_s7 = smov 8  }
  0x4d   : > { %2806 = dma.hbm_to_vmem [thread:$0]  (!%p3574_p6), %s3191_s17, 256, %s3193_s26, %s3195_s15, %s3044_s29, %s3044_s29, %s3045_s7  }
  0x4e   : > { %p3575_p11 = scmp.ne.s32.totalorder %s3571_s11, 0 }
  0x4f   : > { %s3226_s13 = sand.u32 (!%p3575_p11), 1, %s3031_s22   ;;  %p3576_p13 = scmp.ne.s32.totalorder (!%p3575_p11), %s3568_s8, 0 }
  0x50   : > { %259 = sbr.rel (%p3575_p11) target bundleno = 793 (0x319), region = 40  ;;  %s3229_s14 = sshll.u32 (!%p3575_p11), %s3226_s13, 4 }
  0x51   : > { %s262_s16 = scalar_lea.sflag (!%p3575_p11), [#allocation3], %s3226_s13  ;;  %s265_s28 = scalar_lea.vmem (!%p3575_p11), [#allocation2], %s3229_s14 }
  0x57   : > { %3006 = dma.done.wait (%p3576_p13), %s262_s16, 256  }
  0x58   : > { %3008 = vsyncadd (%p3576_p13), %s262_s16, 4294967040  ;;  %p3577_p6 = scmp.eq.s32.totalorder %s3109_s25, 0 }
  0x5a   : > { %3010 = dma.done.wait (%p3577_p6), [#allocation5], 16   ;;  %p3578_p3 = pmov %p3577_p6 }
  0x5c   : > { %3012 = vsyncadd (%p3578_p3), [#allocation5], 4294967280  ;;  %p3579_p9 = pmov %p3578_p3 }
  0x5d   : > { %p3580_p1 = pmov %p3578_p3 }
  0x5e   : > { %3014 = dma.done.wait (%p3579_p9), [#allocation8], 16  }
  0x5f   : > { %3016 = vsyncadd (%p3580_p1), [#allocation8], 4294967280 }
  0x60   : > { %278 = sfence }
  0x61   : > { %v3245_v0 = vld [vmem:[%s265_s28] sm:$0xff]  ;;  %v3247_v1 = vld [vmem:[%s265_s28 + $0x8] sm:$0xff]  ;;  %vm315_vm0 = vcmask 64512   ;;  %s811_s26 = sld [smem:[#allocation6]]  ;;  %s2582_s15 = sld [smem:[#allocation6 + $0x1]]  ;;  %vm1362_vm1 = vcmask 195584  }
  0x62   : > { %v311_v2 = vld [vmem:[%s3556_s1] sm:$0xff]  ;;  %v3253_v3 = vand.u32 4294901760, %v3245_v0  ;;  %v3256_v4 = vand.u32 4294901760, %v3247_v1  ;;  %v312_v5 = vld [vmem:[%s3556_s1 + $0x8] sm:$0xff]  ;;  %s814_s12 = sld [smem:[#allocation7]]  ;;  %s2583_s20 = sld [smem:[#allocation7 + $0x1]] }
  0x63   : > { %v317_v6 = vsel %vm315_vm0, %v311_v2, 0  ;;  %v320_v7 = vsel %vm315_vm0, %v312_v5, 0  ;;  %s3046_s18 = smov 1   ;;  %s3048_s29 = smov 127  }
  0x64   : > { %v388_v8 = vand.u32 4294901760, %v317_v6  ;;  %2634 = vmatprep.subr.mxu0 %v3253_v3  ;;  %2664 = vmatprep.subr.mxu1 %v3256_v4  ;;  %v398_v9 = vand.u32 4294901760, %v320_v7  ;;  %v410_v10 = vsub.f32 %v3245_v0, %v3253_v3  ;;  %v935_v11 = vsub.f32 %v3247_v1, %v3256_v4  ;;  %s300_s28 = scalar_lea.vmem [#allocation9], %s3229_s14  ;;  %s307_s8 = scalar_lea.vmem [#allocation10], %s3229_s14 }
  0x65   : > { %2635 = vmatpush3.msra.mxu0 %v3253_v3  ;;  %2665 = vmatpush3.msra.mxu1 %v3256_v4  ;;  %s2425_s11 = sshll.u32 %s300_s28, 4  ;;  %s2441_s19 = sshll.u32 %s307_s8, 4  ;;  %s3469_s11 = int_to_ptr.vmem [resolvable:$true] %s2425_s11  ;;  %s3471_s19 = int_to_ptr.vmem [resolvable:$true] %s2441_s19 }
  0x66   : > { %v389_v12 = vsub.f32 %v317_v6, %v388_v8  ;;  %v399_v13 = vsub.f32 %v320_v7, %v398_v9  ;;  %v411_v14 = vand.u32 4294901760, %v410_v10  ;;  %v936_v15 = vand.u32 4294901760, %v935_v11  ;;  %s2596_s17 = sshll.u32 %s3109_s25, 8  ;;  %p3581_p2 = scmp.ne.s32.totalorder %s3569_s9, 0 }
  0x67   : > { %v812_v26 = vstv %s811_s26  ;;  %v818_v27 = vstv %s2582_s15  ;;  %v3047_v7 = vmov 0.0   ;;  %s3049_s7 = smov [#allocation9]  }
  0x68   : > { %v390_v16 = vand.u32 4294901760, %v389_v12  ;;  %v400_v17 = vand.u32 4294901760, %v399_v13  ;;  %v412_v18 = vsub.f32 %v410_v10, %v411_v14  ;;  %v937_v19 = vsub.f32 %v935_v11, %v936_v15  ;;  %s2937_s16 = sshll.u32 %s3049_s7, 4  ;;  %s2938_s16 = int_to_ptr.vmem [resolvable:$false] %s2937_s16 }
  0x69   : > { %v813_v28 = vmul.f32 %v812_v26, %v3245_v0  ;;  %v819_v29 = vmul.f32 %v818_v27, %v3245_v0  ;;  %v815_v30 = vstv %s814_s12  ;;  %v821_v31 = vstv %s2583_s20  ;;  %s3476_s12 = scalar_lea.hbm %s3560_s5, %s2596_s17  ;;  %s3481_s20 = scalar_lea.hbm %s3561_s6, %s2596_s17 }
  0x6a   : > { %v391_v20 = vsub.f32 %v389_v12, %v390_v16  ;;  %v401_v21 = vsub.f32 %v399_v13, %v400_v17  ;;  %v413_v22 = vand.u32 4294901760, %v412_v18  ;;  %v938_v23 = vand.u32 4294901760, %v937_v19  ;;  %s2939_s26 = scalar_lea.vmem %s2938_s16, 512  ;;  %p2940_p4 = scmp.lt.s32.totalorder %s3469_s11, %s2938_s16 }
  0x6b   : > { %v1336_v32 = vmul.f32 %v3247_v1, %v812_v26  ;;  %v1338_v33 = vmul.f32 %v3247_v1, %v818_v27  ;;  %v816_v34 = vadd.f32 %v815_v30, %v813_v28  ;;  %v822_v35 = vadd.f32 %v821_v31, %v819_v29 }
  0x6c   : > { %v392_v24 = vand.u32 4294901760, %v391_v20  ;;  %v402_v25 = vand.u32 4294901760, %v401_v21  ;;  %2639 = vmatprep.subr.mxu0 %v413_v22  ;;  %2669 = vmatprep.subr.mxu1 %v938_v23 }
  0x6d   : > { %v1337_v36 = vadd.f32 %v1336_v32, %v815_v30  ;;  %v1339_v37 = vadd.f32 %v1338_v33, %v821_v31  ;;  %v823_v38 = vmax.f32 %v816_v34, %v822_v35 }
  0x6e   : > { %2636 = vmatprep.mubr.f32.mxu0 %v392_v24  ;;  %2666 = vmatprep.mubr.f32.mxu1 %v392_v24 }
  0x6f   : > { %2637 = vmatmul.mubr.f32.vlgmr.msra.gmra.mrb[0].mxu0 %v402_v25  ;;  %2667 = vmatmul.mubr.f32.vlgmr.msra.gmra.mrb[0].mxu1 %v402_v25  ;;  %v1340_v39 = vmax.f32 %v1337_v36, %v1339_v37  ;;  %v827_v40 = vsub.f32 %v822_v35, %v823_v38  ;;  %v824_v41 = vsub.f32 %v816_v34, %v823_v38 }
  0x70   : > { %2640 = vmatpush3.msra.mxu0 %v413_v22  ;;  %2641 = vmatprep.mubr.f32.mxu0 %v388_v8 }
  0x71   : > { %2670 = vmatpush3.msra.mxu1 %v938_v23  ;;  %2671 = vmatprep.mubr.f32.mxu1 %v388_v8  ;;  %v1344_v42 = vsub.f32 %v1339_v37, %v1340_v39  ;;  %v1341_v43 = vsub.f32 %v1337_v36, %v1340_v39  ;;  %v828_v44 = vmul.f32 1.442695, %v827_v40  ;;  %v825_v45 = vmul.f32 1.442695, %v824_v41 }
  0x72   : > { %2644 = vmatprep.subr.mxu0 %v410_v10  ;;  %2674 = vmatprep.subr.mxu1 %v935_v11 }
  0x73   : > { %v1345_v46 = vmul.f32 1.442695, %v1344_v42  ;;  %v1342_v47 = vmul.f32 1.442695, %v1341_v43  ;;  %2861 = vpow2.f32 %v828_v44 }
  0x74   : > { %2863 = vpow2.f32 %v825_v45 }
  0x75   : > { %2865 = vpow2.f32 %v1345_v46 }
  0x76   : > { %2867 = vpow2.f32 %v1342_v47 }
  0x77   : > { %2642 = vmatmul.mubr.f32.vlgmr.msra.gmra.mrb[0].mxu0 %v398_v9  ;;  %2672 = vmatmul.mubr.f32.vlgmr.msra.gmra.mrb[0].mxu1 %v398_v9 }
  0x78   : > { %2645 = vmatpush3.msra.mxu0 %v410_v10  ;;  %2646 = vmatprep.mubr.f32.mxu0 %v389_v12 }
  0x79   : > { %2675 = vmatpush3.msra.mxu1 %v935_v11  ;;  %2676 = vmatprep.mubr.f32.mxu1 %v389_v12 }
  0x7a   : > { %2649 = vmatprep.subr.mxu0 %v3253_v3  ;;  %2679 = vmatprep.subr.mxu1 %v3256_v4 }
  0x7d   : > { %v2862_v48 = vpop.eup %2861 }
  0x7e   : > { %v2864_v49 = vpop.eup %2863 }
  0x7f   : > { %2647 = vmatmul.mubr.f32.vlgmr.msra.gmra.mrb[0].mxu0 %v399_v13  ;;  %2677 = vmatmul.mubr.f32.vlgmr.msra.gmra.mrb[0].mxu1 %v399_v13  ;;  %v2866_v50 = vpop.eup %2865  ;;  %v830_v52 = vadd.f32 %v2864_v49, %v2862_v48 }
  0x80   : > { %2650 = vmatpush3.msra.mxu0 %v3253_v3  ;;  %2651 = vmatprep.mubr.f32.mxu0 %v390_v16  ;;  %v2868_v51 = vpop.eup %2867 }
  0x81   : > { %2680 = vmatpush3.msra.mxu1 %v3256_v4  ;;  %2681 = vmatprep.mubr.f32.mxu1 %v390_v16  ;;  %v1347_v53 = vadd.f32 %v2868_v51, %v2866_v50  ;;  %2869 = vrcp.f32 %v830_v52 }
  0x82   : > { %2654 = vmatprep.subr.mxu0 %v411_v14  ;;  %2684 = vmatprep.subr.mxu1 %v936_v15 }
  0x83   : > { %2871 = vrcp.f32 %v1347_v53 }
  0x87   : > { %2652 = vmatmul.mubr.f32.vlgmr.msra.gmra.mrb[0].mxu0 %v400_v17  ;;  %2682 = vmatmul.mubr.f32.vlgmr.msra.gmra.mrb[0].mxu1 %v400_v17 }
  0x88   : > { %2655 = vmatpush3.msra.mxu0 %v411_v14  ;;  %2656 = vmatprep.mubr.f32.mxu0 %v388_v8 }
  0x89   : > { %2685 = vmatpush3.msra.mxu1 %v936_v15  ;;  %2686 = vmatprep.mubr.f32.mxu1 %v388_v8 }
  0x8a   : > { %2659 = vmatprep.subr.mxu0 %v3253_v3  ;;  %2689 = vmatprep.subr.mxu1 %v3256_v4 }
  0x8b   : > { %v2870_v62 = vpop.eup %2869 }
  0x8f   : > { %2657 = vmatmul.mubr.f32.vlgmr.msra.gmra.mrb[0].mxu0 %v398_v9  ;;  %2687 = vmatmul.mubr.f32.vlgmr.msra.gmra.mrb[0].mxu1 %v398_v9 }
  0x90   : > { %2660 = vmatpush3.msra.mxu0 %v3253_v3  ;;  %2661 = vmatprep.mubr.f32.mxu0 %v388_v8  ;;  %v2872_v3 = vpop.eup %2871 }
  0x91   : > { %2690 = vmatpush3.msra.mxu1 %v3256_v4  ;;  %2691 = vmatprep.mubr.f32.mxu1 %v388_v8 }
  0x97   : > { %2662 = vmatmul.mubr.f32.vlgmr.msra.gmra.mrb[0].mxu0 %v398_v9  ;;  %2692 = vmatmul.mubr.f32.vlgmr.msra.gmra.mrb[0].mxu1 %v398_v9  ;;  %v313_v9 = vld [vmem:[%s3557_s2] sm:$0xff] }
  0x98   : > { %1436 = vmatprep.mubr.f32.mxu0 %v3047_v7  ;;  %1953 = vmatprep.mubr.f32.mxu1 %v3047_v7 }
 0x16a   : > { %v2663_v54 = vpop.f32.mrb[0].mxu0  ;;  %v2693_v55 = vpop.f32.mrb[0].mxu1 }
 0x16b   : > { %v832_v56 = vmul.f32 %v2862_v48, %v2663_v54  ;;  %v1349_v57 = vmul.f32 %v2866_v50, %v2693_v55  ;;  %v801_v58 = vpop.f32.mrb[1].mxu0  ;;  %v1326_v59 = vpop.f32.mrb[1].mxu1 }
 0x16c   : > { %v831_v60 = vmul.f32 %v2864_v49, %v801_v58  ;;  %v1348_v61 = vmul.f32 %v2868_v51, %v1326_v59 }
 0x16e   : > { %v833_v63 = vadd.f32 %v832_v56, %v831_v60  ;;  %v1350_v2 = vadd.f32 %v1349_v57, %v1348_v61 }
 0x170   : > { %v835_v4 = vmul.f32 %v2870_v62, %v833_v63  ;;  %v1352_v5 = vmul.f32 %v2872_v3, %v1350_v2 }
 0x172   : > { %841 = vrot.lane.b32.xlu0 %v835_v4, %s3046_s18  ;;  %v836_v6 = vsub.f32 %v3245_v0, %v835_v4  ;;  %v1353_v8 = vsub.f32 %v3247_v1, %v1352_v5  ;;  %v1364_v0 = vsel %vm1362_vm1, %v313_v9, 0  ;;  %v1370_v11 = vand.u32 4294901760, %v835_v4 }
 0x173   : > { %v3288_v10 = vand.u32 4294901760, %v1364_v0  ;;  %v1887_v13 = vand.u32 4294901760, %v1352_v5 }
 0x174   : > { %837 = vrot.lane.b32.xlu1 %v836_v6, %s3046_s18  ;;  %v1372_v12 = vand.u32 4294901760, %v836_v6  ;;  %v3293_v1 = vsub.f32 %v835_v4, %v1370_v11  ;;  %v1889_v18 = vand.u32 4294901760, %v1353_v8 }
 0x175   : > { %v3291_v14 = vsub.f32 %v1364_v0, %v3288_v10  ;;  %v3297_v17 = vsub.f32 %v1352_v5, %v1887_v13 }
 0x176   : > { %1358 = vrot.lane.b32.xlu0 %v1352_v5, %s3046_s18  ;;  %v3295_v16 = vsub.f32 %v836_v6, %v1372_v12  ;;  %v1462_v25 = vand.u32 4294901760, %v3293_v1  ;;  %v3307_v27 = vsub.f32 %v1353_v8, %v1889_v18 }
 0x177   : > { %v3300_v19 = vand.u32 4294901760, %v3291_v14  ;;  %v1979_v30 = vand.u32 4294901760, %v3297_v17 }
 0x178   : > { %1354 = vrot.lane.b32.xlu1 %v1353_v8, %s3046_s18  ;;  %v1468_v29 = vand.u32 4294901760, %v3295_v16  ;;  %v1463_v39 = vsub.f32 %v3293_v1, %v1462_v25  ;;  %v1985_v44 = vand.u32 4294901760, %v3307_v27  ;;  %s2407_s18 = scalar_lea.sflag [#allocation4], %s3226_s13 }
 0x179   : > { %v1440_v28 = vsub.f32 %v3291_v14, %v3300_v19  ;;  %v1980_v48 = vsub.f32 %v3297_v17, %v1979_v30 }
 0x17a   : > { %843 = vrot.lane.b32.xlu0 %v835_v4, %s3048_s29  ;;  %v1469_v43 = vsub.f32 %v3295_v16, %v1468_v29  ;;  %v1464_v57 = vand.u32 4294901760, %v1463_v39  ;;  %v1986_v62 = vsub.f32 %v3307_v27, %v1985_v44 }
 0x17b   : > { %v1441_v47 = vand.u32 4294901760, %v1440_v28  ;;  %v1981_v4 = vand.u32 4294901760, %v1980_v48 }
 0x17c   : > { %1360 = vrot.lane.b32.xlu1 %v1352_v5, %s3048_s29  ;;  %v1470_v61 = vand.u32 4294901760, %v1469_v43 }
 0x17e   : > { %839 = vrot.lane.b32.xlu0 %v836_v6, %s3048_s29 }
 0x180   : > { %1356 = vrot.lane.b32.xlu1 %v1353_v8, %s3048_s29  ;;  %s2933_s29 = scalar_lea.vmem %s3469_s11, 256 }
 0x181   : > { %p2934_p5 = scmp.ne.s32.totalorder %s3469_s11, %s2933_s29  ;;  %p2941_p12 = scmp.lt.s32.totalorder %s2939_s26, %s2933_s29 }
 0x183   : > { %p2935_p8 = pnand %p2934_p5, %p3581_p2  ;;  %p2942_p0 = por %p2941_p12, %p2940_p4 }
 0x185   : > { %p2936_p10 = pneg %p2935_p8 }
 0x187   : > { %p2943_p7 = pnand %p2942_p0, %p2936_p10 }
 0x1e4   : > { %v842_v15 = vpop.permute.xlu0 %841 }
 0x1e5   : > { %v1366_v20 = vand.u32 4294901760, %v842_v15 }
 0x1e6   : > { %v838_v21 = vpop.permute.xlu1 %837 }
 0x1e7   : > { %v3302_v22 = vpack.c.bf16 %v1370_v11, %v1366_v20  ;;  %v3304_v23 = vsub.f32 %v842_v15, %v1366_v20  ;;  %v1368_v24 = vand.u32 4294901760, %v838_v21 }
 0x1e8   : > { %v1359_v26 = vpop.permute.xlu0 %1358 }
 0x1e9   : > { %v1450_v31 = vand.u32 4294901760, %v3304_v23  ;;  %v3314_v32 = vpack.c.bf16 %v1372_v12, %v1368_v24  ;;  %v3316_v33 = vsub.f32 %v838_v21, %v1368_v24  ;;  %v1883_v34 = vand.u32 4294901760, %v1359_v26  ;;  %2695 = vmatprep.subr.bf16.mxu0 %v3302_v22 }
 0x1ea   : > { %v1355_v35 = vpop.permute.xlu1 %1354  ;;  %v1987_v21 = vand.u32 4294901760, %v1986_v62 }
 0x1eb   : > { %v1451_v36 = vsub.f32 %v3304_v23, %v1450_v31  ;;  %v1456_v37 = vand.u32 4294901760, %v3316_v33  ;;  %v3323_v38 = vpack.c.bf16 %v1887_v13, %v1883_v34  ;;  %2697 = vmatpush1.bf16.msra.mxu0 %v3314_v32  ;;  %v3329_v40 = vsub.f32 %v1359_v26, %v1883_v34 }
 0x1ec   : > { %v1885_v41 = vand.u32 4294901760, %v1355_v35  ;;  %v844_v42 = vpop.permute.xlu0 %843 }
 0x1ed   : > { %v1457_v45 = vsub.f32 %v3316_v33, %v1456_v37  ;;  %v3338_v46 = vand.u32 4294901760, %v844_v42  ;;  %2719 = vmatprep.subr.bf16.mxu1 %v3323_v38  ;;  %v1967_v49 = vand.u32 4294901760, %v3329_v40  ;;  %v1452_v53 = vand.u32 4294901760, %v1451_v36 }
 0x1ee   : > { %v3345_v50 = vpack.c.bf16 %v1889_v18, %v1885_v41  ;;  %v3347_v51 = vsub.f32 %v1355_v35, %v1885_v41  ;;  %v1361_v52 = vpop.permute.xlu1 %1360 }
 0x1ef   : > { %v1458_v54 = vand.u32 4294901760, %v1457_v45  ;;  %v3350_v55 = vsub.f32 %v844_v42, %v3338_v46  ;;  %v3352_v56 = vand.u32 4294901760, %v1361_v52  ;;  %1375 = vmatprep.subr.mxu0 %v3338_v46  ;;  %v1968_v58 = vsub.f32 %v3329_v40, %v1967_v49 }
 0x1f0   : > { %v1973_v59 = vand.u32 4294901760, %v3347_v51  ;;  %2721 = vmatpush1.bf16.msra.mxu1 %v3345_v50  ;;  %v840_v60 = vpop.permute.xlu0 %839  ;;  %v2698_v8 = vpack.c.bf16 %v1464_v57, %v1452_v53  ;;  %v2702_v45 = vpack.c.bf16 %v3293_v1, %v3304_v23  ;;  %v2728_v53 = vpack.c.bf16 %v3307_v27, %v3347_v51 }
 0x1f1   : > { %v1474_v63 = vand.u32 4294901760, %v3350_v55  ;;  %v3365_v2 = vsub.f32 %v1361_v52, %v3352_v56  ;;  %v3367_v3 = vand.u32 4294901760, %v840_v60  ;;  %1892 = vmatprep.subr.mxu1 %v3352_v56  ;;  %v2700_v9 = vpack.c.bf16 %v1470_v61, %v1458_v54 }
 0x1f2   : > { %v1974_v5 = vsub.f32 %v3347_v51, %v1973_v59  ;;  %v1357_v6 = vpop.permute.xlu1 %1356  ;;  %v1969_v0 = vand.u32 4294901760, %v1968_v58  ;;  %v2726_v52 = vpack.c.bf16 %v3297_v17, %v3329_v40  ;;  %v2710_v54 = vpack.c.bf16 %v1462_v25, %v1450_v31 }
 0x1f3   : > { %v1991_v11 = vand.u32 4294901760, %v3365_v2  ;;  %v3375_v12 = vsub.f32 %v840_v60, %v3367_v3  ;;  %v3377_v13 = vand.u32 4294901760, %v1357_v6  ;;  %1377 = vmatpush1.msra.mxu0 %v3367_v3  ;;  %v1475_v15 = vsub.f32 %v3350_v55, %v1474_v63 }
 0x1f4   : > { %v1975_v18 = vand.u32 4294901760, %v1974_v5  ;;  %1442 = vmatmul.mubr.f32.vlgmr.msra.gmra.mrb[2].mxu0 %v1441_v47  ;;  %2699 = vmatprep.subr.bf16.mxu0 %v2698_v8  ;;  %v2722_v20 = vpack.c.bf16 %v1981_v4, %v1969_v0  ;;  %v2712_v23 = vpack.c.bf16 %v1468_v29, %v1456_v37  ;;  %v2736_v1 = vpack.c.bf16 %v1985_v44, %v1973_v59 }
 0x1f5   : > { %v1480_v24 = vand.u32 4294901760, %v3375_v12  ;;  %v3385_v26 = vsub.f32 %v1357_v6, %v3377_v13  ;;  %2701 = vmatpush1.bf16.msra.mxu0 %v2700_v9  ;;  %1894 = vmatpush1.msra.mxu1 %v3377_v13  ;;  %v1476_v28 = vand.u32 4294901760, %v1475_v15  ;;  %v1992_v34 = vsub.f32 %v3365_v2, %v1991_v11 }
 0x1f6   : > { %1959 = vmatmul.mubr.f32.vlgmr.msra.gmra.mrb[2].mxu1 %v1441_v47  ;;  %2723 = vmatprep.subr.bf16.mxu1 %v2722_v20  ;;  %v2724_v35 = vpack.c.bf16 %v1987_v21, %v1975_v18  ;;  %v2704_v47 = vpack.c.bf16 %v3295_v16, %v3316_v33 }
 0x1f7   : > { %v1481_v36 = vsub.f32 %v3375_v12, %v1480_v24  ;;  %v1997_v39 = vand.u32 4294901760, %v3385_v26  ;;  %1477 = vmatprep.subr.mxu0 %v1476_v28  ;;  %v1993_v41 = vand.u32 4294901760, %v1992_v34  ;;  %1542 = vmatprep.mubr.f32.mxu0 %v3047_v7 }
 0x1f8   : > { %2725 = vmatpush1.bf16.msra.mxu1 %v2724_v35  ;;  %2059 = vmatprep.mubr.f32.mxu1 %v3047_v7 }
 0x1f9   : > { %v1482_v42 = vand.u32 4294901760, %v1481_v36  ;;  %v1998_v43 = vsub.f32 %v3385_v26, %v1997_v39  ;;  %1994 = vmatprep.subr.mxu1 %v1993_v41 }
 0x1fb   : > { %v1999_v48 = vand.u32 4294901760, %v1998_v43  ;;  %1483 = vmatpush1.msra.mxu0 %v1482_v42 }
 0x1fc   : > { %1544 = vmatmul.mubr.f32.vlgmr.msra.gmra.mrb[2].mxu0 %v3288_v10  ;;  %2703 = vmatprep.subr.bf16.mxu0 %v2702_v45 }
 0x1fd   : > { %2705 = vmatpush1.bf16.msra.mxu0 %v2704_v47  ;;  %2000 = vmatpush1.msra.mxu1 %v1999_v48 }
 0x1fe   : > { %1564 = vmatprep.subr.mxu0 %v3350_v55  ;;  %2061 = vmatmul.mubr.f32.vlgmr.msra.gmra.mrb[2].mxu1 %v3288_v10 }
 0x1ff   : > { %2727 = vmatprep.subr.bf16.mxu1 %v2726_v52  ;;  %1626 = vmatprep.mubr.f32.mxu0 %v3047_v7 }
 0x200   : > { %2729 = vmatpush1.bf16.msra.mxu1 %v2728_v53  ;;  %2143 = vmatprep.mubr.f32.mxu1 %v3047_v7 }
 0x201   : > { %2081 = vmatprep.subr.mxu1 %v3365_v2  ;;  %1567 = vmatpush1.msra.mxu0 %v3375_v12 }
 0x202   : > { %2707 = vmatprep.subr.bf16.mxu0 %v3302_v22 }
 0x204   : > { %2084 = vmatpush1.msra.mxu1 %v3385_v26  ;;  %1629 = vmatmul.mubr.f32.vlgmr.msra.gmra.mrb[2].mxu0 %v3291_v14 }
 0x205   : > { %2709 = vmatpush1.bf16.msra.mxu0 %v3314_v32  ;;  %2731 = vmatprep.subr.bf16.mxu1 %v3323_v38 }
 0x206   : > { %1644 = vmatprep.subr.mxu0 %v3338_v46  ;;  %2146 = vmatmul.mubr.f32.vlgmr.msra.gmra.mrb[2].mxu1 %v3291_v14  ;;  %v2734_v14 = vpack.c.bf16 %v1979_v30, %v1967_v49 }
 0x207   : > { %2733 = vmatpush1.bf16.msra.mxu1 %v3345_v50  ;;  %1705 = vmatprep.mubr.f32.mxu0 %v3047_v7 }
 0x208   : > { %2161 = vmatprep.subr.mxu1 %v3352_v56  ;;  %2222 = vmatprep.mubr.f32.mxu1 %v3047_v7 }
 0x209   : > { %1646 = vmatpush1.msra.mxu0 %v3367_v3 }
 0x20a   : > { %2711 = vmatprep.subr.bf16.mxu0 %v2710_v54 }
 0x20b   : > { %2163 = vmatpush1.msra.mxu1 %v3377_v13 }
 0x20c   : > { %2735 = vmatprep.subr.bf16.mxu1 %v2734_v14  ;;  %1709 = vmatmul.mubr.f32.vlgmr.msra.gmra.mrb[2].mxu0 %v3300_v19 }
 0x20d   : > { %2713 = vmatpush1.bf16.msra.mxu0 %v2712_v23  ;;  %1797 = vmatprep.mubr.f32.mxu0 %v3047_v7 }
 0x20e   : > { %1734 = vmatprep.subr.mxu0 %v1474_v63  ;;  %2226 = vmatmul.mubr.f32.vlgmr.msra.gmra.mrb[2].mxu1 %v3300_v19 }
 0x20f   : > { %2737 = vmatpush1.bf16.msra.mxu1 %v2736_v1  ;;  %2314 = vmatprep.mubr.f32.mxu1 %v3047_v7 }
 0x210   : > { %2251 = vmatprep.subr.mxu1 %v1991_v11 }
 0x211   : > { %1738 = vmatpush1.msra.mxu0 %v1480_v24 }
 0x212   : > { %2715 = vmatprep.subr.bf16.mxu0 %v3302_v22 }
 0x213   : > { %2255 = vmatpush1.msra.mxu1 %v1997_v39 }
 0x214   : > { %2739 = vmatprep.subr.bf16.mxu1 %v3323_v38  ;;  %1799 = vmatmul.mubr.f32.vlgmr.msra.gmra.mrb[2].mxu0 %v3288_v10 }
 0x215   : > { %2717 = vmatpush1.bf16.msra.mxu0 %v3314_v32  ;;  %1875 = vmatprep.mubr.f32.mxu0 %v3047_v7 }
 0x216   : > { %1814 = vmatprep.subr.mxu0 %v3338_v46  ;;  %2316 = vmatmul.mubr.f32.vlgmr.msra.gmra.mrb[2].mxu1 %v3288_v10 }
 0x217   : > { %2741 = vmatpush1.bf16.msra.mxu1 %v3345_v50  ;;  %2392 = vmatprep.mubr.f32.mxu1 %v3047_v7 }
 0x218   : > { %2331 = vmatprep.subr.mxu1 %v3352_v56 }
 0x219   : > { %1816 = vmatpush1.msra.mxu0 %v3367_v3 }
 0x21b   : > { %2333 = vmatpush1.msra.mxu1 %v3377_v13 }
 0x21c   : > { %1877 = vmatmul.mubr.f32.vlgmr.msra.gmra.mrb[2].mxu0 %v3288_v10 }
 0x21e   : > { %2394 = vmatmul.mubr.f32.vlgmr.msra.gmra.mrb[2].mxu1 %v3288_v10 }
 0x2ef   : > { %v1878_v7 = vpop.f32.mrb[2].mxu0 }
 0x2f0   : > { %2400 = vst [vmem:[%s300_s28] sm:$0xff] %v1878_v7  ;;  %v1880_v10 = vpop.f32.mrb[3].mxu0 }
 0x2f1   : > { %2401 = vst [vmem:[%s307_s8] sm:$0xff] %v1880_v10  ;;  %v2395_v16 = vpop.f32.mrb[2].mxu1 }
 0x2f2   : > { %2585 = vst [vmem:[%s300_s28 + $0x8] sm:$0xff] %v2395_v16  ;;  %v2397_v17 = vpop.f32.mrb[3].mxu1 }
 0x2f3   : > { %2586 = vst [vmem:[%s307_s8 + $0x8] sm:$0xff] %v2397_v17 }
 0x2f4   : > { %2946 = shalt.err (!%p2943_p7)
}
 0x2f5   : > { %s2947_s28 = scalar_lea.hbm %s3476_s12, 256  ;;  %s2951_s15 = scalar_lea.hbm %s3560_s5, 512 }
 0x2f6   : > { %p2948_p11 = scmp.ne.s32.totalorder %s3476_s12, %s2947_s28  ;;  %p2952_p3 = scmp.lt.u32.totalorder %s3476_s12, %s3560_s5 }
 0x2f7   : > { %p2953_p9 = scmp.lt.u32.totalorder %s2951_s15, %s2947_s28  ;;  %p2955_p5 = scmp.lt.u32.totalorder %s2947_s28, %s3476_s12 }
 0x2f8   : > { %p2949_p13 = pnand %p2948_p11, %p3581_p2 }
 0x2f9   : > { %p2954_p1 = por %p2953_p9, %p2952_p3 }
 0x2fa   : > { %p2950_p6 = pneg %p2949_p13 }
 0x2fb   : > { %p2956_p8 = por %p2955_p5, %p2954_p1 }
 0x2fd   : > { %p2957_p10 = pnand %p2956_p8, %p2950_p6 }
 0x2ff   : > { %2960 = shalt.err (!%p2957_p10)
}
 0x300   : > { %s3050_s29 = smov 128   ;;  %s3051_s7 = smov 8  }
 0x301   : > { %2792 = dma.vmem_to_hbm [thread:$0]  (%p3581_p2), %s3469_s11, 256, %s3476_s12, %s2407_s18, %s3050_s29, %s3050_s29, %s3051_s7  }
 0x302   : > { %s2412_s16 = scalar_lea.sflag [#allocation11], %s3226_s13  ;;  %s2961_s26 = scalar_lea.vmem %s3471_s19, 256 }
 0x303   : > { %p2962_p4 = scmp.ne.s32.totalorder %s3471_s19, %s2961_s26  ;;  %s3052_s28 = smov [#allocation10]  }
 0x304   : > { %s2965_s8 = sshll.u32 %s3052_s28, 4  ;;  %s2966_s8 = int_to_ptr.vmem [resolvable:$false] %s2965_s8 }
 0x305   : > { %p2963_p12 = pnand %p2962_p4, %p3581_p2  ;;  %s2967_s17 = scalar_lea.vmem %s2966_s8, 512 }
 0x306   : > { %p2968_p7 = scmp.lt.s32.totalorder %s3471_s19, %s2966_s8  ;;  %p2969_p11 = scmp.lt.s32.totalorder %s2967_s17, %s2961_s26 }
 0x307   : > { %p2964_p0 = pneg %p2963_p12 }
 0x308   : > { %p2970_p13 = por %p2969_p11, %p2968_p7 }
 0x30a   : > { %p2971_p6 = pnand %p2970_p13, %p2964_p0 }
 0x30c   : > { %2974 = shalt.err (!%p2971_p6)
}
 0x30d   : > { %s2975_s11 = scalar_lea.hbm %s3481_s20, 256  ;;  %s2979_s15 = scalar_lea.hbm %s3561_s6, 512 }
 0x30e   : > { %p2976_p3 = scmp.ne.s32.totalorder %s3481_s20, %s2975_s11  ;;  %p2980_p5 = scmp.lt.u32.totalorder %s3481_s20, %s3561_s6 }
 0x30f   : > { %p2981_p8 = scmp.lt.u32.totalorder %s2979_s15, %s2975_s11  ;;  %p2983_p4 = scmp.lt.u32.totalorder %s2975_s11, %s3481_s20 }
 0x310   : > { %p2977_p9 = pnand %p2976_p3, %p3581_p2 }
 0x311   : > { %p2982_p10 = por %p2981_p8, %p2980_p5 }
 0x312   : > { %p2978_p1 = pneg %p2977_p9 }
 0x313   : > { %p2984_p12 = por %p2983_p4, %p2982_p10 }
 0x315   : > { %p2985_p0 = pnand %p2984_p12, %p2978_p1 }
 0x317   : > { %2988 = shalt.err (!%p2985_p0)
}
 0x318   : > { %2793 = dma.vmem_to_hbm [thread:$0]  (%p3581_p2), %s3471_s19, 256, %s3481_s20, %s2412_s16, %s3050_s29, %s3050_s29, %s3051_s7  }
 0x319 PF: > { %s2456_s26 = sand.u32 1, %s3027_s21   ;;  %p3582_p7 = scmp.ne.s32.totalorder %s3570_s10, 0 }
 0x31a   : > { %p3583_p11 = scmp.ge.s32.totalorder %s3039_s24, 2  ;;  %s2457_s28 = scalar_lea.sflag [#allocation4], %s2456_s26 }
 0x31c   : > { %p2808_p13 = pnand %p3583_p11, %p3582_p7 }
 0x31e   : > { %3018 = dma.done.wait (!%p2808_p13), %s2457_s28, 256  }
 0x31f   : > { %3020 = vsyncadd (!%p2808_p13), %s2457_s28, 4294967040  ;;  %s2466_s9 = scalar_lea.sflag [#allocation11], %s2456_s26 }
 0x320   : > { %3022 = dma.done.wait (!%p2808_p13), %s2466_s9, 256  }
 0x321   : > { %3024 = vsyncadd (!%p2808_p13), %s2466_s9, 4294967040  ;;  %p25_p2 = scmp.ge.s32.totalorder %s3113_s27, 4   ;;  %s3584_s21 = smov %s3031_s22 }
 0x322   : > { %s3585_s22 = smov %s3035_s23  ;;  %s3586_s23 = smov %s3125_s30 }
 0x323   : > { %s3587_s24 = smov %s3113_s27  ;;  %27 = sbr.rel (!%p25_p2) target bundleno = 9 (0x9), region = 114 }
 0x32a   :  { %2471 = vsyncpa [#allocation3], 1 }
 0x32b   :  { %2473 = vsyncpa [#allocation3 + $0x1], 1 }
 0x32c   :  { %2474 = vsyncpa [#allocation4], 1 }
 0x32d   :  { %2476 = vsyncpa [#allocation4 + $0x1], 1 }
 0x32e   :  { %2477 = vsyncpa [#allocation11], 1 }
 0x32f   :  { %2479 = vsyncpa [#allocation11 + $0x1], 1 }
 0x330   :  { %2480 = vsyncpa [#allocation5], 1 }
 0x331   :  { %2482 = vsyncpa [#allocation5 + $0x1], 1 }
 0x332   :  { %2483 = vsyncpa [#allocation8], 1 }

</bundles_post_ra>
